<compile_context>
chip_gen: v7x
topology: tpu7x:2x2x1
jax: 0.10.0
libtpu: 0.0.40
codegen_flags: <defaults>
</compile_context>

<pallas_src>
import functools

import jax
import jax.numpy as jnp
from jax.experimental import pallas as pl
from jax.experimental.pallas import tpu as pltpu

_OUT_PAD = 128       # lane-dense output width (unmasked stores)
_MAX_TILE_B = 1024   # batch rows per grid step (multiple of 8)


def _round_up(x, m):
    return (x + m - 1) // m * m


def _mlp_kernel(x_ref, w1_ref, b1_ref, w2_ref, b2_ref, o_ref):
    # Linear1 + ReLU (MXU matmul, f32 accumulate; padded hidden lanes stay 0).
    h = jnp.dot(x_ref[...], w1_ref[...], preferred_element_type=jnp.float32)
    h = jnp.maximum(h + b1_ref[...], 0.0)            # (tile_b, 384) + (1, 384), f32
    # Linear2 — cast h to the weight dtype so a bf16 weight path stays
    # bf16-native on the MXU; f32 weights make this a no-op cast.
    out = jnp.dot(h.astype(w2_ref.dtype), w2_ref[...],
                  preferred_element_type=jnp.float32)
    o_ref[...] = (out + b2_ref[...]).astype(o_ref.dtype)


def prepare_net1_params(w1, b1, w2, b2, param_dtype=jnp.float32):
    """Pad (and optionally cast) Net1 parameters ONCE, outside the per-call path.

    w1: (N_STATES, 300), b1: (300,) or (1, 300)
    w2: (300, N_ACTIONS), b2: (N_ACTIONS,) or (1, N_ACTIONS)
    param_dtype: jnp.float32 (exact PyTorch-style numerics) or jnp.bfloat16
                 (halves weight/x DMA bytes on v6e/v7x; f32 accumulate kept).

    Zero padding keeps the math exact: padded W1 cols / b1 lanes give h == 0
    there (ReLU keeps them 0); padded W2 rows contribute nothing; padded W2
    cols / b2 lanes only feed fake output columns that are sliced off.
    """
    n_states, hidden = w1.shape
    n_actions = w2.shape[1]
    hidden_pad = _round_up(hidden, 128)               # 300 -> 384
    out_pad = _round_up(max(n_actions, 1), _OUT_PAD)  # 4   -> 128

    w1 = jnp.asarray(w1, jnp.float32)
    b1 = jnp.asarray(b1, jnp.float32).reshape(1, hidden)
    w2 = jnp.asarray(w2, jnp.float32)
    b2 = jnp.asarray(b2, jnp.float32).reshape(1, n_actions)

    w1p = jnp.pad(w1, ((0, 0), (0, hidden_pad - hidden))).astype(param_dtype)
    b1p = jnp.pad(b1, ((0, 0), (0, hidden_pad - hidden)))                   # f32
    w2p = jnp.pad(w2, ((0, hidden_pad - hidden),
                       (0, out_pad - n_actions))).astype(param_dtype)
    b2p = jnp.pad(b2, ((0, 0), (0, out_pad - n_actions)))                   # f32
    return w1p, b1p, w2p, b2p, n_actions


@functools.partial(jax.jit, static_argnames=("n_actions",))
def net1_forward(x, w1p, b1p, w2p, b2p, *, n_actions):
    """Fused forward pass of Net1 on pre-padded parameters.

    x: (B, N_STATES) float32 -> returns (B, N_ACTIONS) float32.
    """
    B, n_states = x.shape
    hidden_pad = w1p.shape[1]
    out_pad = w2p.shape[1]
    param_dtype = w1p.dtype

    # Batch tile: multiple of 8 sublanes, up to 1024 rows per grid step.
    tile_b = min(_round_up(B, 8), _MAX_TILE_B)
    b_pad = _round_up(B, tile_b)

    xp = x.astype(param_dtype)
    if b_pad != B:
        xp = jnp.pad(xp, ((0, b_pad - B), (0, 0)))   # zero rows, sliced off below

    grid = (b_pad // tile_b,)

    itemsize = jnp.dtype(param_dtype).itemsize
    cost = pl.CostEstimate(
        flops=2 * b_pad * (n_states * hidden_pad + hidden_pad * out_pad),
        transcendentals=0,
        bytes_accessed=(itemsize * (xp.size + w1p.size + w2p.size)
                        + 4 * (b1p.size + b2p.size + b_pad * out_pad)),
    )

    out = pl.pallas_call(
        _mlp_kernel,
        out_shape=jax.ShapeDtypeStruct((b_pad, out_pad), jnp.float32),
        grid=grid,
        in_specs=[
            # x: batch-tiled along the grid axis.
            pl.BlockSpec((tile_b, n_states), lambda i: (i, 0)),
            # Weights / biases: grid-invariant -> stay resident in VMEM.
            pl.BlockSpec((n_states, hidden_pad), lambda i: (0, 0)),
            pl.BlockSpec((1, hidden_pad), lambda i: (0, 0)),
            pl.BlockSpec((hidden_pad, out_pad), lambda i: (0, 0)),
            pl.BlockSpec((1, out_pad), lambda i: (0, 0)),
        ],
        out_specs=pl.BlockSpec((tile_b, out_pad), lambda i: (i, 0)),
        compiler_params=pltpu.CompilerParams(
            dimension_semantics=("parallel",),
        ),
        cost_estimate=cost,
    )(xp, w1p, b1p, w2p, b2p)

    # Strip batch padding and the lane-padded fake action columns (stays inside
    # this jit; for inner RL loops, consume the padded buffer directly instead).
    return out[:B, :n_actions]


def init_net1_params(key, n_states, n_actions, hidden=300):
    """Deterministic init mimicking PyTorch nn.Linear default:
    U(-1/sqrt(fan_in), 1/sqrt(fan_in)) for both weights and biases.
    Returns logical (unpadded) shapes; pad once via prepare_net1_params()."""
    k1, k2, k3, k4 = jax.random.split(key, 4)
    bound1 = 1.0 / jnp.sqrt(jnp.float32(n_states))
    bound2 = 1.0 / jnp.sqrt(jnp.float32(hidden))
    w1 = jax.random.uniform(k1, (n_states, hidden), jnp.float32, -bound1, bound1)
    b1 = jax.random.uniform(k2, (1, hidden), jnp.float32, -bound1, bound1)
    w2 = jax.random.uniform(k3, (hidden, n_actions), jnp.float32, -bound2, bound2)
    b2 = jax.random.uniform(k4, (1, n_actions), jnp.float32, -bound2, bound2)
    return w1, b1, w2, b2


if __name__ == "__main__":
    N_STATES = 32
    N_ACTIONS = 4
    BATCH = 8  # realistic DQN batch; at this size the call is dispatch-bound

    key = jax.random.PRNGKey(0)
    k_params, k_x = jax.random.split(key)

    w1, b1, w2, b2 = init_net1_params(k_params, N_STATES, N_ACTIONS)
    x = jax.random.normal(k_x, (BATCH, N_STATES), jnp.float32)

    # Pad / stage parameters ONCE (default f32; pass param_dtype=jnp.bfloat16
    # on v6e/v7x for halved weight DMA with f32 accumulation).
    w1p, b1p, w2p, b2p, n_actions = prepare_net1_params(w1, b1, w2, b2)

    out = net1_forward(x, w1p, b1p, w2p, b2p, n_actions=n_actions)
    out = jax.block_until_ready(out)

    # Reference check in plain JAX (same math, unpadded).
    ref = jnp.maximum(x @ w1 + b1, 0.0) @ w2 + b2
    assert out.shape == (BATCH, N_ACTIONS)
    assert jnp.allclose(out, ref, atol=1e-5, rtol=1e-5)

    print("KERNEL_OK")
</pallas_src>

<mosaic_0001>
module attributes {stable_mosaic.version = 11 : i64} {
  func.func @_mlp_kernel(%arg0: i32, %arg1: memref<8x32xf32, #tpu.memory_space<vmem>>, %arg2: memref<32x384xf32, #tpu.memory_space<vmem>>, %arg3: memref<1x384xf32, #tpu.memory_space<vmem>>, %arg4: memref<384x128xf32, #tpu.memory_space<vmem>>, %arg5: memref<1x128xf32, #tpu.memory_space<vmem>>, %arg6: memref<8x128xf32, #tpu.memory_space<vmem>>) attributes {dimension_semantics = [#tpu.dimension_semantics<parallel>], iteration_bounds = array<i64: 1>, scalar_prefetch = 0 : i64, scratch_operands = 0 : i64, tpu.core_type = #tpu.core_type<tc>, window_params = [{transform_indices = @transform_0, window_bounds = array<i64: 8, 32>}, {pipeline_mode = #tpu.pipeline_mode<synchronous>, transform_indices = @transform_1, window_bounds = array<i64: 32, 384>}, {pipeline_mode = #tpu.pipeline_mode<synchronous>, transform_indices = @transform_2, window_bounds = array<i64: 1, 384>}, {pipeline_mode = #tpu.pipeline_mode<synchronous>, transform_indices = @transform_3, window_bounds = array<i64: 384, 128>}, {pipeline_mode = #tpu.pipeline_mode<synchronous>, transform_indices = @transform_4, window_bounds = array<i64: 1, 128>}, {transform_indices = @transform_5, window_bounds = array<i64: 8, 128>}]} {
    %c0 = arith.constant 0 : index
    %c0_0 = arith.constant 0 : index
    %0 = vector.load %arg1[%c0, %c0_0] : memref<8x32xf32, #tpu.memory_space<vmem>>, vector<8x32xf32>
    %c0_1 = arith.constant 0 : index
    %c0_2 = arith.constant 0 : index
    %1 = vector.load %arg2[%c0_1, %c0_2] : memref<32x384xf32, #tpu.memory_space<vmem>>, vector<32x384xf32>
    %cst = arith.constant dense<0.000000e+00> : vector<8x384xf32>
    %2 = tpu.matmul %0, %1, %cst {dimension_numbers = #tpu.dot_dimension_numbers<[1], [0], [0], [1], [0, 0, 1, 1], [], []>} : vector<8x32xf32>, vector<32x384xf32>, vector<8x384xf32> -> vector<8x384xf32>
    %c0_3 = arith.constant 0 : index
    %c0_4 = arith.constant 0 : index
    %3 = vector.load %arg3[%c0_3, %c0_4] : memref<1x384xf32, #tpu.memory_space<vmem>>, vector<1x384xf32>
    %4 = vector.broadcast %3 : vector<1x384xf32> to vector<8x384xf32>
    %5 = arith.addf %2, %4 : vector<8x384xf32>
    %cst_5 = arith.constant 0.000000e+00 : f32
    %6 = vector.broadcast %cst_5 : f32 to vector<8x384xf32>
    %7 = arith.maximumf %5, %6 : vector<8x384xf32>
    %c0_6 = arith.constant 0 : index
    %c0_7 = arith.constant 0 : index
    %8 = vector.load %arg4[%c0_6, %c0_7] : memref<384x128xf32, #tpu.memory_space<vmem>>, vector<384x128xf32>
    %cst_8 = arith.constant dense<0.000000e+00> : vector<8x128xf32>
    %9 = tpu.matmul %7, %8, %cst_8 {dimension_numbers = #tpu.dot_dimension_numbers<[1], [0], [0], [1], [0, 0, 1, 1], [], []>} : vector<8x384xf32>, vector<384x128xf32>, vector<8x128xf32> -> vector<8x128xf32>
    %c0_9 = arith.constant 0 : index
    %c0_10 = arith.constant 0 : index
    %10 = vector.load %arg5[%c0_9, %c0_10] : memref<1x128xf32, #tpu.memory_space<vmem>>, vector<1x128xf32>
    %11 = vector.broadcast %10 : vector<1x128xf32> to vector<8x128xf32>
    %12 = arith.addf %9, %11 : vector<8x128xf32>
    %c0_11 = arith.constant 0 : index
    %c0_12 = arith.constant 0 : index
    %13 = vector.load %arg6[%c0_11, %c0_12] : memref<8x128xf32, #tpu.memory_space<vmem>>, vector<8x128xf32>
    tpu.vector_store %arg6[%c0_11, %c0_12], %12 {strides = array<i32>} : memref<8x128xf32, #tpu.memory_space<vmem>>, vector<8x128xf32>,
    return
  }
  func.func @transform_0(%arg0: i32) -> (i32, i32) {
    %c0_i32 = arith.constant 0 : i32
    %c0_i32_0 = arith.constant 0 : i32
    return %arg0, %c0_i32 : i32, i32
  }
  func.func @transform_1(%arg0: i32) -> (i32, i32) {
    %c0_i32 = arith.constant 0 : i32
    %c0_i32_0 = arith.constant 0 : i32
    %c0_i32_1 = arith.constant 0 : i32
    return %c0_i32, %c0_i32_0 : i32, i32
  }
  func.func @transform_2(%arg0: i32) -> (i32, i32) {
    %c0_i32 = arith.constant 0 : i32
    %c0_i32_0 = arith.constant 0 : i32
    %c0_i32_1 = arith.constant 0 : i32
    return %c0_i32, %c0_i32_0 : i32, i32
  }
  func.func @transform_3(%arg0: i32) -> (i32, i32) {
    %c0_i32 = arith.constant 0 : i32
    %c0_i32_0 = arith.constant 0 : i32
    %c0_i32_1 = arith.constant 0 : i32
    return %c0_i32, %c0_i32_0 : i32, i32
  }
  func.func @transform_4(%arg0: i32) -> (i32, i32) {
    %c0_i32 = arith.constant 0 : i32
    %c0_i32_0 = arith.constant 0 : i32
    %c0_i32_1 = arith.constant 0 : i32
    return %c0_i32, %c0_i32_0 : i32, i32
  }
  func.func @transform_5(%arg0: i32) -> (i32, i32) {
    %c0_i32 = arith.constant 0 : i32
    %c0_i32_0 = arith.constant 0 : i32
    return %arg0, %c0_i32 : i32, i32
  }
}

</mosaic_0001>

<bundles_post_ra>
// kernel: net1_forward.1
= control target key start
LH: loop header
LB: loop body
LE: loop exit
PB: predicated region body
PF: predicated region fallthrough
CT: control target
= control target key end

     0   :  { %10 = vsyncpa [#allocation3], 0  ;;  %s797_s0 = inlined_call_operand.hbm [shape: f32[8,32], index: 0, kind: input, shape index: {}]   ;;  %s798_s1 = inlined_call_operand.hbm [shape: f32[32,384], index: 1, kind: input, shape index: {}]   ;;  %s799_s2 = inlined_call_operand.vmem [shape: f32[1,384], index: 2, kind: input, shape index: {}]   ;;  %s800_s3 = inlined_call_operand.hbm [shape: f32[384,128], index: 3, kind: input, shape index: {}]   ;;  %s801_s4 = inlined_call_operand.vmem [shape: f32[1,128], index: 4, kind: input, shape index: {}]   ;;  %s802_s5 = inlined_call_operand.vmem [shape: f32[8,128], index: 5, kind: output, shape index: {}]  }
   0x1   :  { %11 = vsyncpa [#allocation5], 0  ;;  %s695_s18 = smov [#allocation4]   ;;  %s625_s22 = scalar_lea.hbm %s798_s1, 1536 }
   0x2   :  { %s27_s19 = sshll.u32 %s695_s18, 4  ;;  %p626_p0 = scmp.ne.s32.totalorder %s798_s1, %s625_s22  ;;  %s28_s19 = int_to_ptr.vmem [resolvable:$true] %s27_s19 }
   0x3   :  { %p629_p1 = scmp.lt.u32.totalorder %s625_s22, %s798_s1 }
   0x5   :  { %p631_p2 = pnand %p629_p1, %p626_p0 }
   0x7   :  { %634 = shalt.err (!%p631_p2)
}
   0x8   :  { %s635_s27 = scalar_lea.vmem %s28_s19, 1536  ;;  %p640_p4 = scmp.lt.s32.totalorder %s28_s19, %s28_s19 }
   0x9   :  { %p636_p3 = scmp.ne.s32.totalorder %s28_s19, %s635_s27  ;;  %p641_p5 = scmp.lt.s32.totalorder %s635_s27, %s635_s27 }
   0xb   :  { %p642_p6 = por %p641_p5, %p640_p4 }
   0xd   :  { %p643_p7 = pnand %p642_p6, %p636_p3 }
   0xf   :  { %646 = shalt.err (!%p643_p7)
}
  0x10   :  { %s696_s28 = smov 384   ;;  %s697_s29 = smov 24  }
  0x11   :  { %33 = dma.hbm_to_vmem [thread:$0]  %s798_s1, 1536, %s28_s19, [#allocation5], %s696_s28, %s696_s28, %s697_s29  }
  0x12   :  { %s698_s7 = smov [#allocation2]   ;;  %s699_s9 = smov [#allocation6]  }
  0x13   :  { %s18_s8 = sshll.u32 %s698_s7, 4  ;;  %s41_s10 = sshll.u32 %s699_s9, 4  ;;  %s19_s8 = int_to_ptr.vmem [resolvable:$true] %s18_s8  ;;  %s42_s10 = int_to_ptr.vmem [resolvable:$true] %s41_s10 }
  0x14   :  { %s647_s13 = scalar_lea.hbm %s797_s0, 128 }
  0x15   :  { %p648_p8 = scmp.ne.s32.totalorder %s797_s0, %s647_s13  ;;  %p651_p9 = scmp.lt.u32.totalorder %s647_s13, %s797_s0 }
  0x17   :  { %p653_p10 = pnand %p651_p9, %p648_p8 }
  0x19   :  { %656 = shalt.err (!%p653_p10)
}
  0x1a   :  { %s657_s1 = scalar_lea.vmem %s19_s8, 128  ;;  %p662_p12 = scmp.lt.s32.totalorder %s19_s8, %s19_s8 }
  0x1b   :  { %p658_p11 = scmp.ne.s32.totalorder %s19_s8, %s657_s1  ;;  %p663_p13 = scmp.lt.s32.totalorder %s657_s1, %s657_s1 }
  0x1d   :  { %p664_p0 = por %p663_p13, %p662_p12 }
  0x1f   :  { %p665_p1 = pnand %p664_p0, %p658_p11 }
  0x21   :  { %668 = shalt.err (!%p665_p1)
}
  0x22   :  { %21 = dma.hbm_to_vmem [thread:$0]  %s797_s0, 128, %s19_s8, [#allocation3]  }
  0x23   :  { %s669_s22 = scalar_lea.hbm %s800_s3, 6144 }
  0x24   :  { %p670_p2 = scmp.ne.s32.totalorder %s800_s3, %s669_s22  ;;  %p673_p3 = scmp.lt.u32.totalorder %s669_s22, %s800_s3 }
  0x26   :  { %p675_p4 = pnand %p673_p3, %p670_p2 }
  0x28   :  { %678 = shalt.err (!%p675_p4)
}
  0x29   :  { %s679_s27 = scalar_lea.vmem %s42_s10, 6144  ;;  %p684_p6 = scmp.lt.s32.totalorder %s42_s10, %s42_s10 }
  0x2a   :  { %p680_p5 = scmp.ne.s32.totalorder %s42_s10, %s679_s27  ;;  %p685_p7 = scmp.lt.s32.totalorder %s679_s27, %s679_s27 }
  0x2c   :  { %p686_p8 = por %p685_p7, %p684_p6 }
  0x2e   :  { %p687_p9 = pnand %p686_p8, %p680_p5 }
  0x30   :  { %690 = shalt.err (!%p687_p9)
}
  0x31   :  { %s700_s0 = smov 128   ;;  %s701_s28 = smov 8  }
  0x32   :  { %47 = dma.hbm_to_vmem [thread:$0]  %s800_s3, 6144, %s42_s10, [#allocation5], %s700_s0, %s700_s0, %s701_s28  }
  0x33   :  { %691 = dma.done.wait [#allocation3], 128  }
  0x34   :  { %692 = vsyncadd [#allocation3], 4294967168 }
  0x35   :  { %693 = dma.done.wait [#allocation5], 7680  }
  0x36   :  { %694 = vsyncadd [#allocation5], 4294959616  ;;  %v702_v0 = vmov 0.0|0.0   ;;  %v703_v1 = vmov 0.0   ;;  %vm704_vm0 = vmmov 0   ;;  %v61_v2 = vld [vmem:[#allocation4 + $0x8] sm:$0xff] }
  0x37   :  { %553 = vmatprep.subr.bf16.mxu1 %v702_v0  ;;  %157 = vmatprep.mubr.f32.mxu0 %v703_v1  ;;  %v64_v3 = vld [vmem:[#allocation4 + $0x20] sm:$0xff]  ;;  %v63_v6 = vld [vmem:[#allocation4 + $0x18] sm:$0xff]  ;;  %v70_v8 = vld [vmem:[#allocation4 + $0x50] sm:$0xff]  ;;  %vm89_vm1 = vcmask 261120  }
  0x38   :  { %507 = vmatprep.mubr.msk.f32.mxu1 %vm704_vm0, %v703_v1  ;;  %v60_v4 = vld [vmem:[#allocation4] sm:$0xff]  ;;  %v545_v5 = vpack.c.bf16 %v64_v3, %v61_v2  ;;  %v67_v7 = vld [vmem:[#allocation4 + $0x38] sm:$0xff]  ;;  %v66_v11 = vld [vmem:[#allocation4 + $0x30] sm:$0xff] }
  0x39   :  { %v547_v9 = vpack.c.bf16 %v63_v6, %v60_v4  ;;  %v549_v10 = vpack.c.bf16 %v70_v8, %v67_v7  ;;  %v69_v12 = vld [vmem:[#allocation4 + $0x48] sm:$0xff]  ;;  %v62_v13 = vld [vmem:[#allocation4 + $0x10] sm:$0xff]  ;;  %v68_v15 = vld [vmem:[#allocation4 + $0x40] sm:$0xff] }
  0x3a   :  { %546 = vmatprep.subr.bf16.mxu0 %v545_v5  ;;  %v65_v14 = vld [vmem:[#allocation4 + $0x28] sm:$0xff]  ;;  %v551_v16 = vpack.c.bf16 %v69_v12, %v66_v11  ;;  %v71_v18 = vld [vmem:[#allocation4 + $0x58] sm:$0xff]  ;;  %v253_v19 = vld [vmem:[#allocation6 + $0x80] sm:$0xff] }
  0x3b   :  { %548 = vmatpush1.bf16.msra.mxu0 %v547_v9  ;;  %v554_v17 = vpack.c.bf16 %v65_v14, %v62_v13  ;;  %v254_v20 = vld [vmem:[#allocation6 + $0x88] sm:$0xff]  ;;  %v237_v22 = vld [vmem:[#allocation6] sm:$0xff]  ;;  %v557_v24 = vpack.c.bf16 %v71_v18, %v68_v15  ;;  %v255_v25 = vld [vmem:[#allocation6 + $0x90] sm:$0xff] }
  0x3c   :  { %550 = vmatprep.subr.bf16.mxu0 %v549_v10  ;;  %v559_v21 = vpack.c.bf16 %v254_v20, %v253_v19  ;;  %v238_v23 = vld [vmem:[#allocation6 + $0x8] sm:$0xff]  ;;  %v256_v26 = vld [vmem:[#allocation6 + $0x98] sm:$0xff]  ;;  %v269_v27 = vld [vmem:[#allocation6 + $0x100] sm:$0xff] }
  0x3d   :  { %555 = vmatpush3.bf16.msra.mxu1 %v554_v17  ;;  %v270_v28 = vld [vmem:[#allocation6 + $0x108] sm:$0xff]  ;;  %v59_v29 = vld [vmem:[#allocation2] sm:$0xff]  ;;  %v561_v30 = vpack.c.bf16 %v238_v23, %v237_v22  ;;  %v563_v31 = vpack.c.bf16 %v256_v26, %v255_v25  ;;  %v239_v32 = vld [vmem:[#allocation6 + $0x10] sm:$0xff] }
  0x3e   :  { %556 = vmatprep.subr.bf16.mxu1 %v702_v0  ;;  %v240_v33 = vld [vmem:[#allocation6 + $0x18] sm:$0xff]  ;;  %v592_v34 = vpack.c.bf16 %v270_v28, %v269_v27  ;;  %v257_v35 = vld [vmem:[#allocation6 + $0xa0] sm:$0xff]  ;;  %v258_v36 = vld [vmem:[#allocation6 + $0xa8] sm:$0xff] }
  0x3f   :  { %552 = vmatpush1.bf16.msra.mxu0 %v551_v16  ;;  %v271_v37 = vld [vmem:[#allocation6 + $0x110] sm:$0xff]  ;;  %v272_v38 = vld [vmem:[#allocation6 + $0x118] sm:$0xff]  ;;  %v565_v39 = vpack.c.bf16 %v240_v33, %v239_v32  ;;  %v567_v40 = vpack.c.bf16 %v258_v36, %v257_v35  ;;  %v241_v41 = vld [vmem:[#allocation6 + $0x20] sm:$0xff] }
  0x40   :  { %560 = vmatprep.subr.bf16.mxu0 %v559_v21  ;;  %v242_v42 = vld [vmem:[#allocation6 + $0x28] sm:$0xff]  ;;  %v595_v43 = vpack.c.bf16 %v272_v38, %v271_v37  ;;  %v259_v44 = vld [vmem:[#allocation6 + $0xb0] sm:$0xff]  ;;  %v260_v45 = vld [vmem:[#allocation6 + $0xb8] sm:$0xff] }
  0x41   :  { %558 = vmatpush3.bf16.msra.mxu1 %v557_v24  ;;  %v273_v46 = vld [vmem:[#allocation6 + $0x120] sm:$0xff]  ;;  %v274_v47 = vld [vmem:[#allocation6 + $0x128] sm:$0xff]  ;;  %v569_v48 = vpack.c.bf16 %v242_v42, %v241_v41  ;;  %v571_v49 = vpack.c.bf16 %v260_v45, %v259_v44  ;;  %v243_v50 = vld [vmem:[#allocation6 + $0x30] sm:$0xff] }
  0x42   :  { %439 = vmatmul.mubr.msk.f32.vlgmr.msra.gmra.mrb[0].mxu0 %vm89_vm1, %v59_v29  ;;  %591 = vmatprep.subr.bf16.mxu1 %v702_v0  ;;  %v244_v51 = vld [vmem:[#allocation6 + $0x38] sm:$0xff]  ;;  %v598_v52 = vpack.c.bf16 %v274_v47, %v273_v46  ;;  %v261_v53 = vld [vmem:[#allocation6 + $0xc0] sm:$0xff]  ;;  %v262_v54 = vld [vmem:[#allocation6 + $0xc8] sm:$0xff] }
  0x43   :  { %562 = vmatpush3.bf16.msra.mxu0 %v561_v30  ;;  %v275_v55 = vld [vmem:[#allocation6 + $0x130] sm:$0xff]  ;;  %v276_v56 = vld [vmem:[#allocation6 + $0x138] sm:$0xff]  ;;  %v573_v57 = vpack.c.bf16 %v244_v51, %v243_v50  ;;  %v575_v58 = vpack.c.bf16 %v262_v54, %v261_v53  ;;  %v245_v59 = vld [vmem:[#allocation6 + $0x40] sm:$0xff]  ;;  %v74_v30 = vlaneseq }
  0x44   :  { %508 = vmatmul.mubr.msk.f32.vlgmr.msra.gmra.mrb[0].mxu1 %vm89_vm1, %v59_v29  ;;  %564 = vmatprep.subr.bf16.mxu0 %v563_v31  ;;  %v246_v60 = vld [vmem:[#allocation6 + $0x48] sm:$0xff]  ;;  %v601_v61 = vpack.c.bf16 %v276_v56, %v275_v55  ;;  %v263_v62 = vld [vmem:[#allocation6 + $0xd0] sm:$0xff]  ;;  %v264_v63 = vld [vmem:[#allocation6 + $0xd8] sm:$0xff] }
  0x45   :  { %593 = vmatpush3.bf16.msra.mxu1 %v592_v34  ;;  %542 = vmatprep.mubr.msk.f32.mxu1 %vm704_vm0, %v703_v1  ;;  %v277_v1 = vld [vmem:[#allocation6 + $0x140] sm:$0xff]  ;;  %v278_v2 = vld [vmem:[#allocation6 + $0x148] sm:$0xff]  ;;  %v577_v3 = vpack.c.bf16 %v246_v60, %v245_v59  ;;  %v579_v4 = vpack.c.bf16 %v264_v63, %v263_v62  ;;  %v247_v5 = vld [vmem:[#allocation6 + $0x50] sm:$0xff]  ;;  %v75_v31 = vshrl.u32 %v74_v30, 7 }
  0x46   :  { %594 = vmatprep.subr.bf16.mxu1 %v702_v0  ;;  %v248_v6 = vld [vmem:[#allocation6 + $0x58] sm:$0xff]  ;;  %v604_v7 = vpack.c.bf16 %v278_v2, %v277_v1  ;;  %v265_v8 = vld [vmem:[#allocation6 + $0xe0] sm:$0xff]  ;;  %v266_v9 = vld [vmem:[#allocation6 + $0xe8] sm:$0xff] }
  0x47   :  { %566 = vmatpush3.bf16.msra.mxu0 %v565_v39  ;;  %v581_v10 = vpack.c.bf16 %v248_v6, %v247_v5  ;;  %v583_v11 = vpack.c.bf16 %v266_v9, %v265_v8  ;;  %v249_v12 = vld [vmem:[#allocation6 + $0x60] sm:$0xff]  ;;  %v250_v13 = vld [vmem:[#allocation6 + $0x68] sm:$0xff]  ;;  %v279_v14 = vld [vmem:[#allocation6 + $0x150] sm:$0xff]  ;;  %v76_v32 = vsub.s32 0, %v75_v31  ;;  %v80_v34 = vsub.s32 1, %v75_v31 }
  0x48   :  { %568 = vmatprep.subr.bf16.mxu0 %v567_v40  ;;  %v585_v15 = vpack.c.bf16 %v250_v13, %v249_v12  ;;  %v280_v16 = vld [vmem:[#allocation6 + $0x158] sm:$0xff]  ;;  %v267_v18 = vld [vmem:[#allocation6 + $0xf0] sm:$0xff]  ;;  %v281_v23 = vld [vmem:[#allocation6 + $0x160] sm:$0xff]  ;;  %v84_v35 = vsub.s32 2, %v75_v31 }
  0x49   :  { %596 = vmatpush3.bf16.msra.mxu1 %v595_v43  ;;  %v607_v17 = vpack.c.bf16 %v280_v16, %v279_v14  ;;  %v268_v19 = vld [vmem:[#allocation6 + $0xf8] sm:$0xff]  ;;  %v251_v21 = vld [vmem:[#allocation6 + $0x70] sm:$0xff]  ;;  %v282_v25 = vld [vmem:[#allocation6 + $0x168] sm:$0xff] }
  0x4a   :  { %597 = vmatprep.subr.bf16.mxu1 %v702_v0  ;;  %v587_v20 = vpack.c.bf16 %v268_v19, %v267_v18  ;;  %v252_v22 = vld [vmem:[#allocation6 + $0x78] sm:$0xff]  ;;  %v610_v26 = vpack.c.bf16 %v282_v25, %v281_v23  ;;  %v283_v27 = vld [vmem:[#allocation6 + $0x170] sm:$0xff] }
  0x4b   :  { %570 = vmatpush3.bf16.msra.mxu0 %v569_v48  ;;  %v589_v24 = vpack.c.bf16 %v252_v22, %v251_v21  ;;  %v284_v28 = vld [vmem:[#allocation6 + $0x178] sm:$0xff] }
  0x4c   :  { %572 = vmatprep.subr.bf16.mxu0 %v571_v49  ;;  %v613_v29 = vpack.c.bf16 %v284_v28, %v283_v27  ;;  %v72_v33 = vld [vmem:[%s799_s2] sm:$0x7] }
  0x4d   :  { %599 = vmatpush3.bf16.msra.mxu1 %v598_v52  ;;  %v77_v36 = vrot.slane %v72_v33, %v76_v32  ;;  %v81_v37 = vrot.slane %v72_v33, %v80_v34  ;;  %v85_v38 = vrot.slane %v72_v33, %v84_v35  ;;  %v441_v51 = vld [vmem:[%s801_s4] ss:$0 sm:$0xff] }
  0x4e   :  { %600 = vmatprep.subr.bf16.mxu1 %v702_v0 }
  0x4f   :  { %574 = vmatpush3.bf16.msra.mxu0 %v573_v57 }
  0x50   :  { %576 = vmatprep.subr.bf16.mxu0 %v575_v58 }
  0x51   :  { %602 = vmatpush3.bf16.msra.mxu1 %v601_v61 }
  0x52   :  { %603 = vmatprep.subr.bf16.mxu1 %v702_v0 }
  0x53   :  { %578 = vmatpush3.bf16.msra.mxu0 %v577_v3 }
  0x54   :  { %580 = vmatprep.subr.bf16.mxu0 %v579_v4 }
  0x55   :  { %605 = vmatpush3.bf16.msra.mxu1 %v604_v7 }
  0x56   :  { %606 = vmatprep.subr.bf16.mxu1 %v702_v0 }
  0x57   :  { %582 = vmatpush3.bf16.msra.mxu0 %v581_v10 }
  0x58   :  { %584 = vmatprep.subr.bf16.mxu0 %v583_v11 }
  0x59   :  { %608 = vmatpush3.bf16.msra.mxu1 %v607_v17 }
  0x5a   :  { %609 = vmatprep.subr.bf16.mxu1 %v702_v0 }
  0x5b   :  { %586 = vmatpush3.bf16.msra.mxu0 %v585_v15 }
  0x5c   :  { %588 = vmatprep.subr.bf16.mxu0 %v587_v20 }
  0x5d   :  { %611 = vmatpush3.bf16.msra.mxu1 %v610_v26 }
  0x5e   :  { %612 = vmatprep.subr.bf16.mxu1 %v702_v0 }
  0x5f   :  { %590 = vmatpush3.bf16.msra.mxu0 %v589_v24 }
  0x61   :  { %614 = vmatpush3.bf16.msra.mxu1 %v613_v29 }
 0x115   :  { %v159_v39 = vpop.f32.mrb[0].mxu0 }
 0x116   :  { %v160_v40 = vadd.f32 %v159_v39, %v77_v36  ;;  %v161_v41 = vpop.f32.mrb[1].mxu0 }
 0x117   :  { %v162_v42 = vadd.f32 %v161_v41, %v81_v37  ;;  %v230_v43 = vpop.f32.mrb[0].mxu1 }
 0x118   :  { %v231_v0 = vadd.f32 %v230_v43, %v85_v38  ;;  %v509_v44 = vpop.f32.mrb[1].mxu1  ;;  %v234_v46 = vmax.f32 %v160_v40, 0.0 }
 0x119   :  { %v235_v45 = vmax.f32 %v162_v42, 0.0 }
 0x11a   :  { %v236_v47 = vmax.f32 %v231_v0, 0.0 }
 0x11b   :  { %356 = vmatprep.mubr.f32.mxu0 %v235_v45 }
 0x11c   :  { %357 = vmatmul.mubr.f32.vlgmr.msra.gmra.mrb[2].mxu0 %v234_v46  ;;  %543 = vmatmul.mubr.f32.vlgmr.msra.gmra.mrb[2].mxu1 %v236_v47 }
 0x1ef   :  { %v479_v48 = vpop.f32.mrb[2].mxu0  ;;  %v428_v49 = vpop.f32.mrb[2].mxu1 }
 0x1f0   :  { %v480_v50 = vpop.f32.mrb[3].mxu0  ;;  %v544_v52 = vpop.f32.mrb[3].mxu1 }
 0x1f1   :  { %v481_v53 = vadd.f32 %v480_v50, %v479_v48 }
 0x1f3   :  { %v359_v54 = vadd.f32 %v481_v53, %v441_v51 }
 0x1f5   :  { %v429_v55 = vadd.f32 %v428_v49, %v359_v54 }
 0x1f7   :  { %432 = vst [vmem:[%s802_s5] sm:$0xff] %v429_v55 }
 0x1f8   :  { %437 = vsyncpa [#allocation3], 1 }
 0x1f9   :  { %438 = vsyncpa [#allocation5], 1 }

</bundles_post_ra>
